<compile_context>
chip_gen: v6e
topology: v6e:2x2x1
jax: 0.10.0
libtpu: 0.0.40
codegen_flags: <defaults>
</compile_context>

<pallas_src>
import functools
import math

import jax
import jax.numpy as jnp
from jax.experimental import pallas as pl
from jax.experimental.pallas import tpu as pltpu

N_FREQS = 4                 # "l" in the PyTorch module (demo value)
_MAX_RECURRENCE_FREQS = 6   # beyond this, double-angle error (~2x/octave) grows too much


def _pe_kernel(x_ref, o_ref, *, n_freqs: int):
    # x_ref: [TM, D] VMEM tile; o_ref: [TM, D * 2 * n_freqs] VMEM tile.
    x = x_ref[...].astype(jnp.float32)
    parts = []
    if n_freqs <= _MAX_RECURRENCE_FREQS:
        # Only two EUP transcendentals per element; higher octaves via VPU
        # angle doubling: sin(2a) = 2 sin a cos a, cos(2a) = cos^2 a - sin^2 a.
        theta = x * jnp.float32(math.pi)          # f0 = 2^0 * pi
        s = jnp.sin(theta)
        c = jnp.cos(theta)
        for i in range(n_freqs):
            if i:
                s, c = 2.0 * s * c, c * c - s * s  # f_i = 2^i * pi
            parts.append(s)
            parts.append(c)
    else:
        # Direct evaluation for large l (accuracy over EUP savings; the kernel
        # is HBM-bound anyway, so extra transcendentals are hidden).
        for i in range(n_freqs):
            theta = x * jnp.float32((2.0 ** i) * math.pi)
            parts.append(jnp.sin(theta))
            parts.append(jnp.cos(theta))
    # One lane-dense store of the whole [TM, 2l*D] slab, matching the
    # torch.cat(..., -1) ordering: sin(f0), cos(f0), sin(f1), cos(f1), ...
    o_ref[...] = jnp.concatenate(parts, axis=-1).astype(o_ref.dtype)


def _choose_tile_rows(m: int, max_rows: int = 4096, min_steps: int = 8) -> int:
    """Row-tile size: multiple of 8, <= max_rows, targeting >= min_steps grid steps.

    >= min_steps keeps both v7x TensorCores fed and gives the pipeline room to
    overlap DMA with compute; max_rows=4096 keeps the triple-buffered VMEM
    footprint (~13.5 MiB for D=32, l=4) under the 32 MiB scoped default on
    every TPU generation (v7x only has 64 MiB physical VMEM).
    """
    if m <= 8:
        return m                     # full-extent block; valid and trivially small
    tm = pl.cdiv(m, min_steps)
    tm = ((tm + 7) // 8) * 8         # sublane (8) alignment
    return max(8, min(tm, max_rows))


def positional_encoding(x: jax.Array, l: int = N_FREQS,
                        block_rows: int = 4096) -> jax.Array:
    """x: [..., D] float -> [..., D * 2 * l] float (same dtype as x)."""
    orig_shape = x.shape
    d = orig_shape[-1]
    x2 = x.reshape(-1, d)
    m = x2.shape[0]
    out_d = d * 2 * l

    tm = _choose_tile_rows(m, block_rows)
    grid = (pl.cdiv(m, tm),)         # partial last block handled by Pallas

    kernel = functools.partial(_pe_kernel, n_freqs=l)

    if l <= _MAX_RECURRENCE_FREQS:
        flops = (1 + 5 * max(l - 1, 0)) * m * d
        transcendentals = 2 * m * d
    else:
        flops = l * m * d
        transcendentals = 2 * l * m * d
    cost = pl.CostEstimate(
        flops=flops,
        transcendentals=transcendentals,
        bytes_accessed=(m * d + m * out_d) * x.dtype.itemsize,
    )

    def build(pipeline_kwargs):
        return pl.pallas_call(
            kernel,
            out_shape=jax.ShapeDtypeStruct((m, out_d), x.dtype),
            grid_spec=pltpu.PrefetchScalarGridSpec(
                num_scalar_prefetch=0,
                grid=grid,
                in_specs=[pl.BlockSpec((tm, d), lambda i: (i, 0),
                                       **pipeline_kwargs)],
                out_specs=pl.BlockSpec((tm, out_d), lambda i: (i, 0),
                                       **pipeline_kwargs),
            ),
            compiler_params=pltpu.CompilerParams(
                # Row axis is fully independent -> shard across both TCs on v7x.
                dimension_semantics=("parallel",),
            ),
            cost_estimate=cost,
        )

    try:
        # 3-deep buffering hides output-DMA turnaround on this writeback-bound
        # kernel (compute per tile is tiny compared to the output DMA).
        out = build(dict(pipeline_mode=pl.Buffered(3)))(x2)
    except Exception:
        # Fallback for jax versions where BlockSpec.pipeline_mode is unsupported.
        out = build({})(x2)

    return out.reshape(*orig_shape[:-1], out_d)


def positional_encoding_ref(x: jnp.ndarray, l: int = N_FREQS) -> jnp.ndarray:
    # Pure-JAX reference mirroring the PyTorch forward exactly.
    freq_bands = (2.0 ** jnp.arange(l)) * jnp.pi
    out = []
    for i in range(l):
        f = freq_bands[i]
        out.append(jnp.sin(f * x))
        out.append(jnp.cos(f * x))
    return jnp.concatenate(out, axis=-1)


if __name__ == "__main__":
    key = jax.random.PRNGKey(0)
    # Small NeRF-ish input: batch=2, seq=8, spatial=16, hidden=32.
    # Flattened it is 256 rows of 32 features -> 8 grid steps of 32 rows,
    # so the pipeline / partial-block / lane-dense-store paths are exercised.
    x = jax.random.normal(key, (2, 8, 16, 32), dtype=jnp.float32)

    out = positional_encoding(x)
    out = jax.block_until_ready(out)

    ref = positional_encoding_ref(x)
    assert out.shape == (2, 8, 16, 32 * 2 * N_FREQS), out.shape
    # Tolerance slightly looser than pure sin/cos because the double-angle
    # recurrence grows error ~2x per octave (measured ~1e-6 absolute for l=4).
    assert jnp.allclose(out, ref, atol=5e-5, rtol=1e-5), "mismatch vs reference"

    print("KERNEL_OK")
</pallas_src>

<mosaic_0001>
module attributes {stable_mosaic.version = 11 : i64} {
  func.func @_pe_kernel(%arg0: i32, %arg1: memref<32x32xf32, #tpu.memory_space<vmem>>, %arg2: memref<32x256xf32, #tpu.memory_space<vmem>>) attributes {dimension_semantics = [#tpu.dimension_semantics<parallel>], iteration_bounds = array<i64: 8>, scalar_prefetch = 0 : i64, scratch_operands = 0 : i64, tpu.core_type = #tpu.core_type<tc>, window_params = [{transform_indices = @transform_0, window_bounds = array<i64: 32, 32>}, {transform_indices = @transform_1, window_bounds = array<i64: 32, 256>}]} {
    %c0 = arith.constant 0 : index
    %c0_0 = arith.constant 0 : index
    %0 = vector.load %arg1[%c0, %c0_0] : memref<32x32xf32, #tpu.memory_space<vmem>>, vector<32x32xf32>
    %cst = arith.constant 3.14159274 : f32
    %1 = vector.broadcast %cst : f32 to vector<32x32xf32>
    %2 = arith.mulf %0, %1 : vector<32x32xf32>
    %3 = math.sin %2 : vector<32x32xf32>
    %4 = math.cos %2 : vector<32x32xf32>
    %cst_1 = arith.constant 2.000000e+00 : f32
    %5 = vector.broadcast %cst_1 : f32 to vector<32x32xf32>
    %6 = arith.mulf %5, %3 : vector<32x32xf32>
    %7 = arith.mulf %6, %4 : vector<32x32xf32>
    %8 = arith.mulf %4, %4 : vector<32x32xf32>
    %9 = arith.mulf %3, %3 : vector<32x32xf32>
    %10 = arith.subf %8, %9 : vector<32x32xf32>
    %cst_2 = arith.constant 2.000000e+00 : f32
    %11 = vector.broadcast %cst_2 : f32 to vector<32x32xf32>
    %12 = arith.mulf %11, %7 : vector<32x32xf32>
    %13 = arith.mulf %12, %10 : vector<32x32xf32>
    %14 = arith.mulf %10, %10 : vector<32x32xf32>
    %15 = arith.mulf %7, %7 : vector<32x32xf32>
    %16 = arith.subf %14, %15 : vector<32x32xf32>
    %cst_3 = arith.constant 2.000000e+00 : f32
    %17 = vector.broadcast %cst_3 : f32 to vector<32x32xf32>
    %18 = arith.mulf %17, %13 : vector<32x32xf32>
    %19 = arith.mulf %18, %16 : vector<32x32xf32>
    %20 = arith.mulf %16, %16 : vector<32x32xf32>
    %21 = arith.mulf %13, %13 : vector<32x32xf32>
    %22 = arith.subf %20, %21 : vector<32x32xf32>
    %23 = tpu.concatenate %3, %4, %7, %10, %13, %16, %19, %22 in 1 : vector<32x32xf32>, vector<32x32xf32>, vector<32x32xf32>, vector<32x32xf32>, vector<32x32xf32>, vector<32x32xf32>, vector<32x32xf32>, vector<32x32xf32> -> vector<32x256xf32>
    %c0_4 = arith.constant 0 : index
    %c0_5 = arith.constant 0 : index
    %24 = vector.load %arg2[%c0_4, %c0_5] : memref<32x256xf32, #tpu.memory_space<vmem>>, vector<32x256xf32>
    tpu.vector_store %arg2[%c0_4, %c0_5], %23 {strides = array<i32>} : memref<32x256xf32, #tpu.memory_space<vmem>>, vector<32x256xf32>,
    return
  }
  func.func @transform_0(%arg0: i32) -> (i32, i32) {
    %c0_i32 = arith.constant 0 : i32
    %c0_i32_0 = arith.constant 0 : i32
    return %arg0, %c0_i32 : i32, i32
  }
  func.func @transform_1(%arg0: i32) -> (i32, i32) {
    %c0_i32 = arith.constant 0 : i32
    %c0_i32_0 = arith.constant 0 : i32
    return %arg0, %c0_i32 : i32, i32
  }
}

</mosaic_0001>

<bundles_post_ra>
// kernel: tpu_custom_call.1
= control target key start
LH: loop header
LB: loop body
LE: loop exit
PB: predicated region body
PF: predicated region fallthrough
CT: control target
= control target key end

     0   :  { %6 = vsyncpa [#allocation3], 0  ;;  %s1986_s0 = inlined_call_operand.vmem [shape: f32[256,32], index: 0, kind: input, shape index: {}]   ;;  %s1987_s1 = inlined_call_operand.hbm [shape: f32[256,256], index: 1, kind: output, shape index: {}]  }
   0x1   :  { %8 = vsyncpa [#allocation3 + $0x1], 0  ;;  %s1435_s6 = smov 0   ;;  %s1437_s7 = smov 0  }
   0x2   :  { %s1439_s8 = smov 0   ;;  %s1441_s9 = smov 0  }
   0x3 LB: > { %s1456_s10 = sadd.s32 4294967295, %s1411_s9   ;;  %s1222_s11 = sadd.s32 4294967294, %s1411_s9   ;;  %s1411_s9 = sphi %s1441_s9, %s1997_s9   ;;  %s1407_s8 = sphi %s1439_s8, %s1996_s8   ;;  %s1403_s7 = sphi %s1437_s7, %s1995_s7   ;;  %s1399_s6 = sphi %s1435_s6, %s1994_s6  }
   0x4   : > { %s1460_s12 = sadd.s32 1, %s1411_s9   ;;  %s47_s13 = sadd.s32 1, %s1407_s8 }
   0x5   : > { %s44_s14 = ssub.s32 %s1411_s9, %s1460_s12  ;;  %p57_p0 = scmp.ne.s32.totalorder %s1407_s8, %s1403_s7 }
   0x6   : > { %p45_p1 = scmp.eq.s32.totalorder %s44_s14, 0  ;;  %p58_p2 = scmp.eq.s32.totalorder %s1456_s10, 7 }
   0x7   : > { %p63_p3 = scmp.ne.s32.totalorder %s1403_s7, %s1399_s6  ;;  %p64_p4 = scmp.eq.s32.totalorder %s1222_s11, 7 }
   0x8   : > { %s1471_s15 = scalar_select %p45_p1, %s1407_s8, %s47_s13  }
   0x9   : > { %p1473_p5 = por %p58_p2, %p57_p0  ;;  %p1477_p6 = por %p64_p4, %p63_p3 }
   0xa   : > { %p1225_p7 = scmp.ge.s32.totalorder %s1411_s9, 1  ;;  %p91_p8 = scmp.lt.s32.totalorder %s1411_s9, 9 }
   0xc   : > { %p92_p9 = pnand %p1225_p7, %p91_p8 }
   0xd   : > { %s1227_s18 = sshll.u32 (!%p92_p9), %s1456_s10, 2  ;;  %s1419_s23 = smov (!%p92_p9), 32  }
   0xe   : > { %95 = sbr.rel (%p92_p9) target bundleno = 339 (0x153), region = 24  ;;  %p112_p10 = scmp.lt.s32.totalorder (!%p92_p9), %s1227_s18, 31 }
   0xf   : > { %s1420_s24 = smov (!%p92_p9), 64   ;;  %s1421_s25 = smov (!%p92_p9), 96  }
  0x10   : > { %s108_s26 = sand.u32 (!%p92_p9), 1, %s1403_s7   ;;  %s1268_s29 = sshll.u32 (!%p92_p9), %s1456_s10, 10 }
  0x11   : > { %s1226_s27 = sshll.u32 (!%p92_p9), %s108_s26, 6  ;;  %s1934_s4 = scalar_lea.hbm (!%p92_p9), %s1987_s1, %s1268_s29 }
  0x12   : > { %s1901_s28 = scalar_lea.vmem (!%p92_p9), [#allocation2], %s1226_s27  ;;  %s1946_s5 = scalar_lea.sflag (!%p92_p9), [#allocation3], %s108_s26 }
  0x13   : > { %s1999_s18 = smov (!%p112_p10, %s1227_s18), 31  ;;  %v1413_v33 = vmov 683565275   ;;  %v1414_v35 = vmov 2475754826   ;;  %s1160_s30 = sshll.u32 %s1901_s28, 4  ;;  %s1936_s30 = int_to_ptr.vmem [resolvable:$true] %s1160_s30 }
  0x14   : > { %s1228_s19 = sshll.u32 %s1999_s18, 3  ;;  %v1415_v37 = vmov 2131351028   ;;  %v1416_v39 = vmov 2102212464   ;;  %s1351_s10 = scalar_lea.vmem %s1936_s30, 1024 }
  0x15   : > { %s1487_s22 = scalar_lea.vmem %s1986_s0, %s1228_s19  ;;  %v1417_v41 = vmov 920167782   ;;  %v1418_v49 = vmov 1326507024   ;;  %p1352_p11 = scmp.ne.s32.totalorder %s1936_s30, %s1351_s10 }
  0x16   : > { %v120_v0 = vld [vmem:[%s1487_s22 + $0x10] sm:$0xff]  ;;  %v118_v1 = vld [vmem:[%s1487_s22] sm:$0xff]  ;;  %v121_v2 = vld [vmem:[%s1487_s22 + $0x18] sm:$0xff]  ;;  %s1422_s11 = smov [#allocation2]  }
  0x17   : > { %v1492_v3 = vmul.f32 3.1415927, %v120_v0  ;;  %v1494_v4 = vmul.f32 3.1415927, %v118_v1  ;;  %v1496_v5 = vmul.f32 3.1415927, %v121_v2  ;;  %p1353_p12 = pnand %p1352_p11, %p1473_p5 }
  0x18   : > { %s1355_s13 = sshll.u32 %s1422_s11, 4  ;;  %s1356_s13 = int_to_ptr.vmem [resolvable:$false] %s1355_s13 }
  0x19   : > { %v334_v6 = vand.u32 2147483647, %v1492_v3  ;;  %v337_v7 = vand.u32 2139095040, %v1492_v3  ;;  %v126_v8 = vand.u32 2147483647, %v1494_v4  ;;  %v129_v9 = vand.u32 2139095040, %v1494_v4  ;;  %p1354_p13 = pneg %p1353_p12  ;;  %p1358_p0 = scmp.lt.s32.totalorder %s1936_s30, %s1356_s13 }
  0x1a   : > { %v441_v14 = vand.u32 2139095040, %v1496_v5  ;;  %v438_v27 = vand.u32 2147483647, %v1496_v5  ;;  %vm336_vm13 = vcmp.lt.s32.totalorder %v1492_v3, 0  ;;  %s1357_s14 = scalar_lea.vmem %s1356_s13, 2048 }
  0x1b   : > { %v338_v10 = vshrl.u32 %v337_v7, 23  ;;  %v341_v11 = vand.u32 8388607, %v334_v6  ;;  %v130_v12 = vshrl.u32 %v129_v9, 23  ;;  %v133_v13 = vand.u32 8388607, %v126_v8  ;;  %p1359_p1 = scmp.lt.s32.totalorder %s1357_s14, %s1351_s10 }
  0x1c   : > { %v442_v17 = vshrl.u32 %v441_v14, 23  ;;  %vm1618_vm14 = vcmp.le.f32.partialorder %v334_v6, 0.7853982 }
  0x1d   : > { %v1237_v15 = vadd.s32 4294967169, %v338_v10  ;;  %v1229_v16 = vadd.s32 4294967169, %v130_v12  ;;  %v342_v19 = vor.u32 8388608, %v341_v11  ;;  %v134_v20 = vor.u32 8388608, %v133_v13  ;;  %p1360_p2 = por %p1359_p1, %p1358_p0 }
  0x1e   : > { %v1241_v22 = vadd.s32 4294967169, %v442_v17 }
  0x1f   : > { %v344_v18 = vadd.s32 1, %v1237_v15  ;;  %v136_v21 = vadd.s32 1, %v1229_v16  ;;  %v1508_v28 = vshll.u32 %v342_v19, 8  ;;  %v1510_v30 = vshll.u32 %v134_v20, 8  ;;  %p1361_p3 = pnand %p1360_p2, %p1354_p13 }
  0x20   : > { %v1512_v31 = vadd.s32 1, %v1241_v22 }
  0x21   : > { %vm345_vm0 = vcmp.gt.s32.totalorder %v344_v18, 0  ;;  %vm137_vm1 = vcmp.gt.s32.totalorder %v136_v21, 0 }
  0x22   : > { %v346_v23 = vsel %vm345_vm0, %v344_v18, 0  ;;  %v138_v26 = vsel %vm137_vm1, %v136_v21, 0  ;;  %vm449_vm6 = vcmp.gt.s32.totalorder %v1512_v31, 0 }
  0x23   : > { %v347_v24 = vshrl.u32 %v346_v23, 5  ;;  %v348_v25 = vand.u32 31, %v346_v23  ;;  %v140_v29 = vand.u32 31, %v138_v26  ;;  %v1519_v43 = vshrl.u32 %v138_v26, 5 }
  0x25   : > { %v349_v32 = vsub.s32 32, %v348_v25  ;;  %v351_v34 = vshll.u32 %v1413_v33, %v348_v25  ;;  %v354_v36 = vshll.u32 %v1414_v35, %v348_v25  ;;  %v357_v38 = vshll.u32 %v1415_v37, %v348_v25 }
  0x26   : > { %v360_v40 = vshll.u32 %v1416_v39, %v348_v25  ;;  %v363_v42 = vshll.u32 %v1417_v41, %v348_v25  ;;  %vm366_vm2 = vcmp.lt.s32.totalorder %v347_v24, 1  ;;  %vm367_vm3 = vcmp.lt.s32.totalorder %v347_v24, 2 }
  0x27   : > { %v350_v44 = vshrl.u32 %v1413_v33, %v349_v32  ;;  %v352_v45 = vshrl.u32 %v1414_v35, %v349_v32  ;;  %v355_v46 = vshrl.u32 %v1415_v37, %v349_v32  ;;  %v358_v47 = vshrl.u32 %v1416_v39, %v349_v32 }
  0x28   : > { %v361_v48 = vshrl.u32 %v1417_v41, %v349_v32  ;;  %v364_v50 = vshrl.u32 %v1418_v49, %v349_v32  ;;  %vm369_vm4 = vcmp.lt.s32.totalorder %v347_v24, 4  ;;  %v141_v54 = vsub.s32 32, %v140_v29 }
  0x29   : > { %v353_v51 = vor.u32 %v352_v45, %v351_v34  ;;  %v356_v52 = vor.u32 %v355_v46, %v354_v36  ;;  %v359_v53 = vor.u32 %v358_v47, %v357_v38  ;;  %vm368_vm5 = vcmp.lt.s32.totalorder %v347_v24, 3 }
  0x2a   : > { %v362_v55 = vor.u32 %v361_v48, %v360_v40  ;;  %v365_v56 = vor.u32 %v364_v50, %v363_v42  ;;  %v143_v57 = vshll.u32 %v1413_v33, %v140_v29  ;;  %v146_v1 = vshll.u32 %v1414_v35, %v140_v29 }
  0x2b   : > { %v370_v58 = vsel %vm366_vm2, %v350_v44, %v353_v51  ;;  %v371_v59 = vsel %vm369_vm4, %v359_v53, 2102212464  ;;  %v374_v60 = vsel %vm366_vm2, %v353_v51, %v356_v52  ;;  %v378_v61 = vsel %vm366_vm2, %v356_v52, %v359_v53 }
  0x2c   : > { %v372_v62 = vsel %vm368_vm5, %v356_v52, %v371_v59  ;;  %v375_v63 = vsel %vm369_vm4, %v362_v55, 920167782  ;;  %v379_v0 = vsel %vm369_vm4, %v365_v56, 1326507024  ;;  %v142_v9 = vshrl.u32 %v1413_v33, %v141_v54  ;;  %v119_v52 = vld [vmem:[%s1487_s22 + $0x8] sm:$0xff] }
  0x2d   : > { %v376_v2 = vsel %vm368_vm5, %v359_v53, %v375_v63  ;;  %v380_v7 = vsel %vm368_vm5, %v362_v55, %v379_v0  ;;  %v144_v10 = vshrl.u32 %v1414_v35, %v141_v54  ;;  %v373_v11 = vsel %vm367_vm3, %v370_v58, %v372_v62 }
  0x2e   : > { %v377_v12 = vsel %vm367_vm3, %v374_v60, %v376_v2  ;;  %v381_v13 = vsel %vm367_vm3, %v378_v61, %v380_v7  ;;  %v147_v14 = vshrl.u32 %v1415_v37, %v141_v54  ;;  %v149_v21 = vshll.u32 %v1415_v37, %v140_v29 }
  0x2f   : > { %v1540_v15 = vmul.u32.u64.low %v1508_v28, %v381_v13  ;;  %v1541_v16 = vmul.u32.u64.high %v1508_v28, %v381_v13, %v1540_v15  ;;  %v1544_v17 = vmul.u32.u64.low %v1508_v28, %v377_v12  ;;  %v1545_v18 = vmul.u32.u64.high %v1508_v28, %v377_v12, %v1544_v17 }
  0x30   : > { %v145_v19 = vor.u32 %v144_v10, %v143_v57  ;;  %v148_v20 = vor.u32 %v147_v14, %v146_v1  ;;  %v150_v22 = vshrl.u32 %v1416_v39, %v141_v54  ;;  %v152_v23 = vshll.u32 %v1416_v39, %v140_v29 }
  0x31   : > { %v153_v24 = vshrl.u32 %v1417_v41, %v141_v54  ;;  %v155_v25 = vshll.u32 %v1417_v41, %v140_v29  ;;  %v156_v26 = vshrl.u32 %v1418_v49, %v141_v54  ;;  %v389_v32 = vmul.u32 %v1508_v28, %v373_v11 }
  0x32   : > { %v151_v34 = vor.u32 %v150_v22, %v149_v21  ;;  %vm158_vm7 = vcmp.lt.s32.totalorder %v1519_v43, 1  ;;  %vm159_vm8 = vcmp.lt.s32.totalorder %v1519_v43, 2  ;;  %vm391_vm9 = vc.u32 %v1541_v16, %v1544_v17 }
  0x33   : > { %v392_v36 = vadd.s32 1, %v1545_v18  ;;  %v154_v38 = vor.u32 %v153_v24, %v152_v23  ;;  %vm160_vm10 = vcmp.lt.s32.totalorder %v1519_v43, 3  ;;  %v157_v40 = vor.u32 %v156_v26, %v155_v25 }
  0x34   : > { %vm161_vm11 = vcmp.lt.s32.totalorder %v1519_v43, 4  ;;  %v162_v29 = vsel %vm158_vm7, %v142_v9, %v145_v19  ;;  %v166_v42 = vsel %vm158_vm7, %v145_v19, %v148_v20  ;;  %v170_v46 = vsel %vm158_vm7, %v148_v20, %v151_v34 }
  0x35   : > { %v393_v28 = vsel %vm391_vm9, %v392_v36, %v1545_v18  ;;  %v163_v44 = vsel %vm161_vm11, %v151_v34, 2102212464  ;;  %v167_v45 = vsel %vm161_vm11, %v154_v38, 920167782  ;;  %v171_v51 = vsel %vm161_vm11, %v157_v40, 1326507024 }
  0x36   : > { %v394_v47 = vadd.s32 %v393_v28, %v389_v32  ;;  %v164_v48 = vsel %vm160_vm10, %v148_v20, %v163_v44  ;;  %v168_v50 = vsel %vm160_vm10, %v151_v34, %v167_v45  ;;  %v172_v55 = vsel %vm160_vm10, %v154_v38, %v171_v51 }
  0x37   : > { %v165_v53 = vsel %vm159_vm8, %v162_v29, %v164_v48  ;;  %v169_v54 = vsel %vm159_vm8, %v166_v42, %v168_v50  ;;  %v450_v56 = vsel %vm449_vm6, %v1512_v31, 0  ;;  %v173_v58 = vsel %vm159_vm8, %v170_v46, %v172_v55 }
  0x38   : > { %v395_v57 = vadd.s32 536870912, %v394_v47  ;;  %v1580_v59 = vmul.u32.u64.low %v1510_v30, %v169_v54  ;;  %v1581_v60 = vmul.u32.u64.high %v1510_v30, %v169_v54, %v1580_v59  ;;  %v1588_v63 = vmul.f32 3.1415927, %v119_v52 }
  0x39   : > { %v1585_v61 = vmul.u32.u64.low %v1510_v30, %v173_v58  ;;  %v1586_v62 = vmul.u32.u64.high %v1510_v30, %v173_v58, %v1585_v61  ;;  %v445_v1 = vand.u32 8388607, %v438_v27  ;;  %v181_v31 = vmul.u32 %v1510_v30, %v165_v53 }
  0x3a   : > { %v396_v0 = vshrl.u32 %v395_v57, 30  ;;  %v452_v2 = vand.u32 31, %v450_v56  ;;  %v184_v7 = vadd.s32 1, %v1581_v60  ;;  %v233_v9 = vand.u32 2139095040, %v1588_v63 }
  0x3b   : > { %vm183_vm12 = vc.u32 %v1586_v62, %v1580_v59  ;;  %v446_v12 = vor.u32 8388608, %v445_v1  ;;  %v1599_v20 = vshrl.u32 %v450_v56, 5  ;;  %v390_v40 = vadd.s32 %v1544_v17, %v1541_v16 }
  0x3c   : > { %v397_v43 = vshll.u32 %v396_v0, 30  ;;  %v185_v11 = vsel %vm183_vm12, %v184_v7, %v1581_v60  ;;  %v453_v14 = vsub.s32 32, %v452_v2  ;;  %v234_v19 = vshrl.u32 %v233_v9, 23 }
  0x3d   : > { %v186_v13 = vadd.s32 %v185_v11, %v181_v31  ;;  %v455_v21 = vshll.u32 %v1413_v33, %v452_v2  ;;  %v1602_v22 = vshll.u32 %v446_v12, 8  ;;  %v458_v25 = vshll.u32 %v1414_v35, %v452_v2 }
  0x3e   : > { %v398_v10 = vsub.s32 %v394_v47, %v397_v43  ;;  %v456_v24 = vshrl.u32 %v1414_v35, %v453_v14  ;;  %v459_v26 = vshrl.u32 %v1415_v37, %v453_v14  ;;  %v461_v34 = vshll.u32 %v1415_v37, %v452_v2 }
  0x3f   : > { %v187_v18 = vadd.s32 536870912, %v186_v13  ;;  %v462_v36 = vshrl.u32 %v1416_v39, %v453_v14  ;;  %v464_v38 = vshll.u32 %v1416_v39, %v452_v2  ;;  %v465_v42 = vshrl.u32 %v1417_v41, %v453_v14 }
  0x40   : > { %v400_v15 = vsub.s32 0, %v398_v10  ;;  %v1233_v28 = vadd.s32 4294967169, %v234_v19  ;;  %v420_v46 = vsub.s32 4, %v396_v0  ;;  %vm470_vm15 = vcmp.lt.s32.totalorder %v1599_v20, 1 }
  0x41   : > { %v1604_v23 = vshrl.u32 %v187_v18, 30  ;;  %vm471_vm0 = vcmp.lt.s32.totalorder %v1599_v20, 2  ;;  %v457_v16 = vor.u32 %v456_v24, %v455_v21  ;;  %v467_v17 = vshll.u32 %v1417_v41, %v452_v2 }
  0x42   : > { %v1238_v30 = vmin.u32 %v400_v15, %v398_v10  ;;  %v468_v48 = vshrl.u32 %v1418_v49, %v453_v14  ;;  %v460_v50 = vor.u32 %v459_v26, %v458_v25  ;;  %v463_v51 = vor.u32 %v462_v36, %v461_v34 }
  0x43   : > { %v189_v29 = vshll.u32 %v1604_v23, 30  ;;  %v466_v6 = vor.u32 %v465_v42, %v464_v38  ;;  %v454_v54 = vshrl.u32 %v1413_v33, %v453_v14  ;;  %vm473_vm2 = vcmp.lt.s32.totalorder %v1599_v20, 4 }
  0x44   : > { %v402_v32 = vclz %v1238_v30  ;;  %v475_v58 = vsel %vm473_vm2, %v463_v51, 2102212464  ;;  %v421_v60 = vsel %vm336_vm13, %v420_v46, %v396_v0  ;;  %v469_v1 = vor.u32 %v468_v48, %v467_v17 }
  0x45   : > { %v1624_v47 = vsub.s32 %v186_v13, %v189_v29  ;;  %vm472_vm3 = vcmp.lt.s32.totalorder %v1599_v20, 3  ;;  %v478_v43 = vsel %vm470_vm15, %v457_v16, %v460_v50  ;;  %v479_v7 = vsel %vm473_vm2, %v466_v6, 920167782 }
  0x46   : > { %v1239_v45 = vadd.s32 4294967294, %v402_v32  ;;  %v182_v9 = vadd.s32 %v1580_v59, %v1586_v62  ;;  %v474_v0 = vsel %vm470_vm15, %v454_v54, %v457_v16  ;;  %v476_v11 = vsel %vm472_vm3, %v460_v50, %v475_v58 }
  0x47   : > { %v192_v53 = vsub.s32 0, %v1624_v47  ;;  %v480_v14 = vsel %vm472_vm3, %v463_v51, %v479_v7  ;;  %v482_v15 = vsel %vm470_vm15, %v460_v50, %v463_v51  ;;  %v423_v18 = vsel %vm1618_vm14, 0, %v421_v60 }
  0x48   : > { %vm1240_vm1 = vcmp.lt.s32.totalorder %v1239_v45, 0  ;;  %v481_v59 = vsel %vm471_vm0, %v478_v43, %v480_v14  ;;  %v483_v62 = vsel %vm473_vm2, %v469_v1, 1326507024  ;;  %vm128_vm4 = vcmp.lt.s32.totalorder %v1494_v4, 0 }
  0x49   : > { %v405_v52 = vsel %vm1240_vm1, 0, %v1239_v45  ;;  %v1230_v61 = vmin.u32 %v192_v53, %v1624_v47  ;;  %v477_v24 = vsel %vm471_vm0, %v474_v0, %v476_v11  ;;  %v484_v25 = vsel %vm472_vm3, %v466_v6, %v483_v62 }
  0x4a   : > { %v406_v55 = vsub.s32 32, %v405_v52  ;;  %v407_v56 = vshll.u32 %v398_v10, %v405_v52  ;;  %v410_v57 = vsub.s32 4294967266, %v405_v52  ;;  %v485_v26 = vsel %vm471_vm0, %v482_v15, %v484_v25 }
  0x4b   : > { %v194_v10 = vclz %v1230_v61  ;;  %v1665_v32 = vmul.u32.u64.low %v1602_v22, %v481_v59  ;;  %v1666_v34 = vmul.u32.u64.high %v1602_v22, %v481_v59, %v1665_v32  ;;  %v240_v16 = vadd.s32 1, %v1233_v28 }
  0x4c   : > { %v408_v31 = vshrl.u32 %v390_v40, %v406_v55  ;;  %v411_v2 = vadd.s32 127, %v410_v57  ;;  %v1670_v40 = vmul.u32.u64.low %v1602_v22, %v485_v26  ;;  %v1671_v29 = vmul.u32.u64.high %v1602_v22, %v485_v26, %v1670_v40 }
  0x4d   : > { %v1231_v19 = vadd.s32 4294967294, %v194_v10  ;;  %v427_v48 = vadd.s32 3, %v423_v18  ;;  %v212_v20 = vsub.s32 4, %v1604_v23  ;;  %v493_v50 = vmul.u32 %v1602_v22, %v477_v24 }
  0x4e   : > { %v409_v12 = vor.u32 %v408_v31, %v407_v56  ;;  %v412_v13 = vshll.u32 %v411_v2, 23  ;;  %v496_v52 = vadd.s32 1, %v1666_v34  ;;  %vm241_vm6 = vcmp.gt.s32.totalorder %v240_v16, 0 }
  0x4f   : > { %vm1232_vm5 = vcmp.lt.s32.totalorder %v1231_v19, 0  ;;  %vm495_vm7 = vc.u32 %v1671_v29, %v1665_v32  ;;  %v230_v54 = vand.u32 2147483647, %v1588_v63  ;;  %v1680_v55 = vand.u32 3, %v423_v18 }
  0x50   : > { %v413_v30 = vor.u32 4788187, %v412_v13  ;;  %v416_v21 = vcvt.s32.f32 %v409_v12  ;;  %v197_v38 = vsel %vm1232_vm5, 0, %v1231_v19  ;;  %vm1684_vm8 = vcmp.le.f32.partialorder %v126_v8, 0.7853982 }
  0x51   : > { %v198_v42 = vsub.s32 32, %v197_v38  ;;  %v199_v45 = vshll.u32 %v1624_v47, %v197_v38  ;;  %v202_v46 = vsub.s32 4294967266, %v197_v38  ;;  %v242_v47 = vsel %vm241_vm6, %v240_v16, 0 }
  0x52   : > { %v414_v36 = vand.u32 2147483647, %v413_v30  ;;  %v497_v57 = vsel %vm495_vm7, %v496_v52, %v1666_v34  ;;  %v1691_v60 = vand.u32 3, %v427_v48  ;;  %v244_v1 = vand.u32 31, %v242_v47 }
  0x53   : > { %v200_v51 = vshrl.u32 %v182_v9, %v198_v42  ;;  %v203_v6 = vadd.s32 127, %v202_v46  ;;  %v498_v61 = vadd.s32 %v497_v57, %v493_v50  ;;  %v213_v43 = vsel %vm128_vm4, %v212_v20, %v1604_v23 }
  0x54   : > { %v417_v17 = vmul.f32 %v416_v21, %v414_v36  ;;  %v245_v9 = vsub.s32 32, %v244_v1  ;;  %v247_v10 = vshll.u32 %v1413_v33, %v244_v1  ;;  %v250_v11 = vshll.u32 %v1414_v35, %v244_v1 }
  0x55   : > { %v201_v22 = vor.u32 %v200_v51, %v199_v45  ;;  %v204_v56 = vshll.u32 %v203_v6, 23  ;;  %v499_v7 = vadd.s32 536870912, %v498_v61  ;;  %v253_v12 = vshll.u32 %v1415_v37, %v244_v1 }
  0x56   : > { %v418_v53 = vxor.u32 2147483648, %v417_v17  ;;  %v243_v44 = vshrl.u32 %v242_v47, 5  ;;  %v248_v14 = vshrl.u32 %v1414_v35, %v245_v9  ;;  %v251_v15 = vshrl.u32 %v1415_v37, %v245_v9 }
  0x57   : > { %v205_v2 = vor.u32 4788187, %v204_v56  ;;  %v208_v8 = vcvt.s32.f32 %v201_v22  ;;  %v1702_v13 = vshrl.u32 %v499_v7, 30  ;;  %v254_v23 = vshrl.u32 %v1416_v39, %v245_v9 }
  0x58   : > { %v419_v58 = vsel %vm336_vm13, %v418_v53, %v417_v17  ;;  %v256_v19 = vshll.u32 %v1416_v39, %v244_v1  ;;  %v257_v59 = vshrl.u32 %v1417_v41, %v245_v9  ;;  %v246_v30 = vshrl.u32 %v1413_v33, %v245_v9 }
  0x59   : > { %v422_v31 = vsel %vm1618_vm14, %v1492_v3, %v419_v58  ;;  %v206_v0 = vand.u32 2147483647, %v205_v2  ;;  %v501_v62 = vshll.u32 %v1702_v13, 30  ;;  %v249_v21 = vor.u32 %v248_v14, %v247_v10 }
  0x5a   : > { %1335 = vcosq.f32 %v422_v31  ;;  %v252_v24 = vor.u32 %v251_v15, %v250_v11  ;;  %v255_v26 = vor.u32 %v254_v23, %v253_v12  ;;  %v258_v34 = vor.u32 %v257_v59, %v256_v19 }
  0x5b   : > { %1337 = vsinq.f32 %v422_v31  ;;  %v209_v18 = vmul.f32 %v208_v8, %v206_v0  ;;  %v259_v35 = vshll.u32 %v1417_v41, %v244_v1  ;;  %vm843_vm9 = vcmp.eq.s32.totalorder %v1680_v55, 0 }
  0x5c   : > { %v1713_v37 = vsub.s32 %v498_v61, %v501_v62  ;;  %v237_v39 = vand.u32 8388607, %v230_v54  ;;  %v260_v36 = vshrl.u32 %v1418_v49, %v245_v9  ;;  %vm429_vm10 = vcmp.lt.s32.totalorder %v1691_v60, 2 }
  0x5d   : > { %v210_v25 = vxor.u32 2147483648, %v209_v18  ;;  %vm842_vm11 = vcmp.lt.s32.totalorder %v1680_v55, 2  ;;  %vm846_vm12 = vcmp.eq.s32.totalorder %v1680_v55, 2  ;;  %v215_v41 = vsel %vm1684_vm8, 0, %v213_v43 }
  0x5e   : > { %vm426_vm13 = vweird.f32 %v1492_v3  ;;  %v504_v49 = vsub.s32 0, %v1713_v37  ;;  %vm262_vm14 = vcmp.lt.s32.totalorder %v243_v44, 1  ;;  %vm265_vm15 = vcmp.lt.s32.totalorder %v243_v44, 4 }
  0x5f   : > { %v211_v33 = vsel %vm128_vm4, %v210_v25, %v209_v18  ;;  %v261_v40 = vor.u32 %v260_v36, %v259_v35  ;;  %v266_v42 = vsel %vm262_vm14, %v246_v30, %v249_v21  ;;  %v267_v45 = vsel %vm265_vm15, %v255_v26, 2102212464 }
  0x60   : > { %v214_v38 = vsel %vm1684_vm8, %v1494_v4, %v211_v33  ;;  %vm430_vm0 = vcmp.eq.s32.totalorder %v1691_v60, 0  ;;  %v1242_v46 = vmin.u32 %v504_v49, %v1713_v37  ;;  %vm264_vm1 = vcmp.lt.s32.totalorder %v243_v44, 3 }
  0x61   : > { %1339 = vcosq.f32 %v214_v38  ;;  %vm433_vm2 = vcmp.eq.s32.totalorder %v1691_v60, 2  ;;  %v238_v16 = vor.u32 8388608, %v237_v39  ;;  %v268_v17 = vsel %vm264_vm1, %v252_v24, %v267_v45 }
  0x62   : > { %1341 = vsinq.f32 %v214_v38  ;;  %v270_v48 = vsel %vm262_vm14, %v249_v21, %v252_v24  ;;  %v219_v20 = vadd.s32 3, %v215_v41  ;;  %v1737_v50 = vand.u32 3, %v215_v41 }
  0x63   : > { %v506_v51 = vclz %v1242_v46  ;;  %vm263_vm3 = vcmp.lt.s32.totalorder %v243_v44, 2  ;;  %v271_v53 = vsel %vm265_vm15, %v258_v34, 920167782  ;;  %v274_v47 = vsel %vm262_vm14, %v252_v24, %v255_v26 }
  0x64   : > { %v1739_v52 = vsel %vm263_vm3, %v266_v42, %v268_v17  ;;  %v275_v28 = vsel %vm265_vm15, %v261_v40, 1326507024  ;;  %v272_v58 = vsel %vm264_vm1, %v255_v26, %v271_v53  ;;  %v278_v8 = vshll.u32 %v238_v16, 8 }
  0x65   : > { %v1243_v57 = vadd.s32 4294967294, %v506_v51  ;;  %v276_v61 = vsel %vm264_vm1, %v258_v34, %v275_v28  ;;  %v273_v31 = vsel %vm263_vm3, %v270_v48, %v272_v58  ;;  %v494_v9 = vadd.s32 %v1665_v32, %v1671_v29 }
  0x66   : > { %v277_v2 = vsel %vm263_vm3, %v274_v47, %v276_v61  ;;  %v220_v11 = vand.u32 3, %v219_v20  ;;  %vm218_vm5 = vweird.f32 %v1494_v4  ;;  %vm636_vm6 = vcmp.lt.s32.totalorder %v1737_v50, 2 }
  0x67   : > { %v1336_v6 = vpop.eup %1335  ;;  %vm1244_vm4 = vcmp.lt.s32.totalorder %v1243_v57, 0  ;;  %v1773_v60 = vmul.u32.u64.low %v278_v8, %v277_v2  ;;  %v1774_v19 = vmul.u32.u64.high %v278_v8, %v277_v2, %v1773_v60  ;;  %vm637_vm7 = vcmp.eq.s32.totalorder %v1737_v50, 0 }
  0x68   : > { %v1338_v22 = vpop.eup %1337  ;;  %v434_v56 = vxor.u32 2147483648, %v1336_v6  ;;  %v509_v12 = vsel %vm1244_vm4, 0, %v1243_v57  ;;  %v1777_v62 = vmul.u32.u64.low %v278_v8, %v273_v31  ;;  %v1778_v3 = vmul.u32.u64.high %v278_v8, %v273_v31, %v1777_v62 }
  0x69   : > { %v431_v1 = vxor.u32 2147483648, %v1338_v22  ;;  %v510_v15 = vsub.s32 32, %v509_v12  ;;  %v511_v18 = vshll.u32 %v1713_v37, %v509_v12  ;;  %v514_v23 = vsub.s32 4294967266, %v509_v12 }
  0x6a   : > { %v848_v43 = vsel %vm846_vm12, %v434_v56, %v1338_v22  ;;  %v435_v7 = vsel %vm433_vm2, %v434_v56, %v1338_v22  ;;  %vm221_vm8 = vcmp.lt.s32.totalorder %v220_v11, 2  ;;  %v285_v34 = vmul.u32 %v278_v8, %v1739_v52 }
  0x6b   : > { %v845_v10 = vsel %vm843_vm9, %v1336_v6, %v431_v1  ;;  %v432_v0 = vsel %vm430_vm0, %v1336_v6, %v431_v1  ;;  %v512_v55 = vshrl.u32 %v494_v9, %v510_v15  ;;  %v515_v59 = vadd.s32 127, %v514_v23 }
  0x6c   : > { %v849_v44 = vsel %vm842_vm11, %v845_v10, %v848_v43  ;;  %v436_v14 = vsel %vm429_vm10, %v432_v0, %v435_v7  ;;  %vm225_vm9 = vcmp.eq.s32.totalorder %v220_v11, 2  ;;  %vm640_vm10 = vcmp.eq.s32.totalorder %v1737_v50, 2 }
  0x6d   : > { %v1763_v32 = vsel %vm426_vm13, nan, %v849_v44  ;;  %v1767_v29 = vsel %vm426_vm13, nan, %v436_v14  ;;  %v513_v21 = vor.u32 %v512_v55, %v511_v18  ;;  %vm222_vm11 = vcmp.eq.s32.totalorder %v220_v11, 0 }
  0x6e   : > { %1022 = vrot.lane.b32.xlu1 %v1763_v32, %s1419_s23  ;;  %v1340_v30 = vpop.eup %1339  ;;  %v516_v26 = vshll.u32 %v515_v59, 23  ;;  %v286_v39 = vadd.s32 %v1777_v62, %v1774_v19  ;;  %vm287_vm12 = vc.u32 %v1774_v19, %v1777_v62  ;;  %v288_v38 = vadd.s32 1, %v1778_v3 }
  0x6f   : > { %v1342_v24 = vpop.eup %1341  ;;  %v226_v25 = vxor.u32 2147483648, %v1340_v30  ;;  %v520_v37 = vcvt.s32.f32 %v513_v21  ;;  %vm440_vm13 = vcmp.lt.s32.totalorder %v1496_v5, 0  ;;  %vm439_vm14 = vcmp.le.f32.partialorder %v438_v27, 0.7853982 }
  0x70   : > { %v223_v35 = vxor.u32 2147483648, %v1342_v24  ;;  %v517_v41 = vor.u32 4788187, %v516_v26  ;;  %v289_v16 = vsel %vm287_vm12, %v288_v38, %v1778_v3  ;;  %v524_v53 = vsub.s32 4, %v1702_v13 }
  0x71   : > { %v642_v36 = vsel %vm640_vm10, %v226_v25, %v1342_v24  ;;  %v227_v33 = vsel %vm225_vm9, %v226_v25, %v1342_v24  ;;  %v290_v48 = vadd.s32 %v289_v16, %v285_v34  ;;  %vm530_vm3 = vweird.f32 %v1496_v5 }
  0x72   : > { %v639_v49 = vsel %vm637_vm7, %v1340_v30, %v223_v35  ;;  %v224_v40 = vsel %vm222_vm11, %v1340_v30, %v223_v35  ;;  %v518_v46 = vand.u32 2147483647, %v517_v41  ;;  %v525_v56 = vsel %vm440_vm13, %v524_v53, %v1702_v13 }
  0x73   : > { %v643_v42 = vsel %vm636_vm6, %v639_v49, %v642_v36  ;;  %v1790_v45 = vsel %vm221_vm8, %v224_v40, %v227_v33  ;;  %v291_v51 = vadd.s32 536870912, %v290_v48  ;;  %v527_v61 = vsel %vm439_vm14, 0, %v525_v56 }
  0x74   : > { %v1795_v17 = vsel %vm218_vm5, nan, %v643_v42  ;;  %v521_v20 = vmul.f32 %v520_v37, %v518_v46  ;;  %v944_v31 = vand.u32 3, %v527_v61  ;;  %vm232_vm4 = vcmp.lt.s32.totalorder %v1588_v63, 0 }
  0x75   : > { %1018 = vrot.lane.b32.xlu0 %v1795_v17, %s1419_s23  ;;  %v292_v6 = vshrl.u32 %v291_v51, 30  ;;  %vm231_vm6 = vcmp.le.f32.partialorder %v230_v54, 0.7853982  ;;  %v531_v26 = vadd.s32 3, %v527_v61  ;;  %v1819_v54 = vsel %vm218_vm5, nan, %v1790_v45 }
  0x76   : > { %v522_v50 = vxor.u32 2147483648, %v521_v20  ;;  %vm949_vm0 = vcmp.eq.s32.totalorder %v944_v31, 2  ;;  %vm946_vm1 = vcmp.eq.s32.totalorder %v944_v31, 0  ;;  %vm945_vm2 = vcmp.lt.s32.totalorder %v944_v31, 2 }
  0x77   : > { %v293_v28 = vshll.u32 %v292_v6, 30  ;;  %v316_v3 = vsub.s32 4, %v292_v6  ;;  %v532_v35 = vand.u32 3, %v531_v26  ;;  %v962_v56 = vmul.f32 %v1795_v17, %v1795_v17 }
  0x78   : > { %v523_v52 = vsel %vm440_vm13, %v522_v50, %v521_v20  ;;  %v954_v20 = vmul.f32 2.0, %v1819_v54  ;;  %vm1110_vm5 = vcmask 261120  }
  0x79   : > { %v526_v47 = vsel %vm439_vm14, %v1496_v5, %v523_v52  ;;  %v294_v22 = vsub.s32 %v290_v48, %v293_v28  ;;  %v317_v24 = vsel %vm232_vm4, %v316_v3, %v292_v6  ;;  %vm534_vm7 = vcmp.eq.s32.totalorder %v532_v35, 0 }
  0x7a   : > { %1343 = vcosq.f32 %v526_v47  ;;  %v319_v34 = vsel %vm231_vm6, 0, %v317_v24  ;;  %vm537_vm8 = vcmp.eq.s32.totalorder %v532_v35, 2  ;;  %vm533_vm9 = vcmp.lt.s32.totalorder %v532_v35, 2 }
  0x7b   : > { %1345 = vsinq.f32 %v526_v47  ;;  %v296_v57 = vsub.s32 0, %v294_v22  ;;  %v323_v37 = vadd.s32 3, %v319_v34  ;;  %v738_v36 = vand.u32 3, %v319_v34 }
  0x7c   : > { %v956_v47 = vmul.f32 2.0, %v1767_v29  ;;  %v958_v28 = vmul.f32 %v954_v20, %v1795_v17 }
  0x7d   : > { %v1234_v58 = vmin.u32 %v296_v57, %v294_v22  ;;  %vm743_vm11 = vcmp.eq.s32.totalorder %v738_v36, 2  ;;  %vm740_vm13 = vcmp.eq.s32.totalorder %v738_v36, 0 }
  0x7e   : > { %v960_v57 = vmul.f32 %v956_v47, %v1763_v32 }
  0x7f   : > { %v298_v1 = vclz %v1234_v58  ;;  %v966_v58 = vmul.f32 %v1819_v54, %v1819_v54 }
  0x81   : > { %v1235_v2 = vadd.s32 4294967294, %v298_v1  ;;  %v970_v17 = vsub.f32 %v962_v56, %v966_v58 }
  0x83   : > { %vm1236_vm15 = vcmp.lt.s32.totalorder %v1235_v2, 0 }
  0x84   : > { %v301_v27 = vsel %vm1236_vm15, 0, %v1235_v2  ;;  %vm739_vm15 = vcmp.lt.s32.totalorder %v738_v36, 2  ;;  %v964_v2 = vmul.f32 %v1763_v32, %v1763_v32 }
  0x85   : > { %v302_v43 = vsub.s32 32, %v301_v27  ;;  %v303_v7 = vshll.u32 %v294_v22, %v301_v27  ;;  %v306_v9 = vsub.s32 4294967266, %v301_v27  ;;  %v968_v27 = vmul.f32 %v1767_v29, %v1767_v29 }
  0x87   : > { %v1344_v8 = vpop.eup %1343  ;;  %v304_v12 = vshrl.u32 %v286_v39, %v302_v43  ;;  %v307_v13 = vadd.s32 127, %v306_v9  ;;  %v324_v39 = vand.u32 3, %v323_v37  ;;  %v974_v9 = vmul.f32 2.0, %v958_v28 }
  0x88   : > { %v1346_v10 = vpop.eup %1345  ;;  %v538_v0 = vxor.u32 2147483648, %v1344_v8 }
  0x89   : > { %v535_v11 = vxor.u32 2147483648, %v1346_v10  ;;  %v305_v15 = vor.u32 %v304_v12, %v303_v7  ;;  %v308_v18 = vshll.u32 %v307_v13, 23  ;;  %vm329_vm10 = vcmp.eq.s32.totalorder %v324_v39, 2 }
  0x8a   : > { %v951_v44 = vsel %vm949_vm0, %v538_v0, %v1346_v10  ;;  %v539_v41 = vsel %vm537_vm8, %v538_v0, %v1346_v10  ;;  %vm326_vm12 = vcmp.eq.s32.totalorder %v324_v39, 0  ;;  %vm325_vm14 = vcmp.lt.s32.totalorder %v324_v39, 2 }
  0x8b   : > { %v948_v14 = vsel %vm946_vm1, %v1344_v8, %v535_v11  ;;  %v309_v60 = vor.u32 4788187, %v308_v18  ;;  %v312_v19 = vcvt.s32.f32 %v305_v15  ;;  %v536_v33 = vsel %vm534_vm7, %v1344_v8, %v535_v11 }
  0x8c   : > { %v952_v23 = vsel %vm945_vm2, %v948_v14, %v951_v44  ;;  %v540_v40 = vsel %vm533_vm9, %v536_v33, %v539_v41  ;;  %vm322_vm0 = vweird.f32 %v1588_v63  ;;  %v972_v10 = vsub.f32 %v964_v2, %v968_v27 }
  0x8d   : > { %v1808_v55 = vsel %vm530_vm3, nan, %v952_v23  ;;  %v310_v59 = vand.u32 2147483647, %v309_v60  ;;  %v1825_v4 = vsel %vm530_vm3, nan, %v540_v40  ;;  %v982_v0 = vmul.f32 %v970_v17, %v970_v17 }
  0x8e   : > { %1024 = vrot.lane.b32.xlu1 %v1808_v55, %s1419_s23  ;;  %v957_v22 = vmul.f32 2.0, %v1825_v4  ;;  %v965_v8 = vmul.f32 %v1808_v55, %v1808_v55  ;;  %v969_v7 = vmul.f32 %v1825_v4, %v1825_v4  ;;  %v986_v11 = vmul.f32 %v958_v28, %v958_v28 }
  0x8f   : > { %v313_v62 = vmul.f32 %v312_v19, %v310_v59  ;;  %v976_v14 = vmul.f32 2.0, %v960_v57  ;;  %v984_v15 = vmul.f32 %v972_v10, %v972_v10  ;;  %v1856_v18 = vmul.f32 %v974_v9, %v970_v17 }
  0x90   : > { %v961_v1 = vmul.f32 %v957_v22, %v1808_v55  ;;  %v973_v12 = vsub.f32 %v965_v8, %v969_v7  ;;  %v990_v23 = vsub.f32 %v982_v0, %v986_v11  ;;  %v988_v60 = vmul.f32 %v960_v57, %v960_v57 }
  0x91   : > { %v314_v30 = vxor.u32 2147483648, %v313_v62  ;;  %v994_v34 = vmul.f32 2.0, %v1856_v18  ;;  %vm1115_vm1 = vcmask 523264   ;;  %vm1120_vm2 = vcmask 785408  }
  0x92   : > { %v985_v55 = vmul.f32 %v973_v12, %v973_v12  ;;  %v977_v19 = vmul.f32 2.0, %v961_v1  ;;  %v989_v3 = vmul.f32 %v961_v1, %v961_v1  ;;  %v1002_v41 = vmul.f32 %v990_v23, %v990_v23 }
  0x93   : > { %v315_v21 = vsel %vm232_vm4, %v314_v30, %v313_v62  ;;  %v1862_v30 = vmul.f32 %v976_v14, %v972_v10  ;;  %v998_v39 = vmul.f32 %v994_v34, %v990_v23 }
  0x94   : > { %v318_v25 = vsel %vm231_vm6, %v1588_v63, %v315_v21  ;;  %v992_v21 = vsub.f32 %v984_v15, %v988_v60  ;;  %v1864_v24 = vmul.f32 %v977_v19, %v973_v12 }
  0x95   : > { %1347 = vcosq.f32 %v318_v25  ;;  %v996_v35 = vmul.f32 2.0, %v1862_v30 }
  0x96   : > { %1349 = vsinq.f32 %v318_v25  ;;  %v993_v25 = vsub.f32 %v985_v55, %v989_v3  ;;  %v997_v36 = vmul.f32 2.0, %v1864_v24 }
  0x97   : > { %v1000_v33 = vmul.f32 %v996_v35, %v992_v21 }
  0xa2   : > { %v1348_v38 = vpop.eup %1347 }
  0xa3   : > { %v1350_v49 = vpop.eup %1349  ;;  %v330_v42 = vxor.u32 2147483648, %v1348_v38 }
  0xa4   : > { %v327_v46 = vxor.u32 2147483648, %v1350_v49 }
  0xa5   : > { %v331_v16 = vsel %vm329_vm10, %v330_v42, %v1350_v49  ;;  %v745_v48 = vsel %vm743_vm11, %v330_v42, %v1350_v49  ;;  %v1001_v49 = vmul.f32 %v997_v36, %v993_v25 }
  0xa6   : > { %v328_v45 = vsel %vm326_vm12, %v1348_v38, %v327_v46  ;;  %v742_v51 = vsel %vm740_vm13, %v1348_v38, %v327_v46  ;;  %v1006_v38 = vmul.f32 %v1856_v18, %v1856_v18 }
  0xa7   : > { %v332_v50 = vsel %vm325_vm14, %v328_v45, %v331_v16  ;;  %v746_v6 = vsel %vm739_vm15, %v742_v51, %v745_v48  ;;  %v1004_v16 = vmul.f32 %v992_v21, %v992_v21  ;;  %v1008_v48 = vmul.f32 %v1862_v30, %v1862_v30 }
  0xa8   : > { %v1827_v52 = vsel %vm322_vm0, nan, %v332_v50  ;;  %v747_v53 = vsel %vm322_vm0, nan, %v746_v6  ;;  %v1010_v46 = vsub.f32 %v1002_v41, %v1006_v38  ;;  %v1005_v45 = vmul.f32 %v993_v25, %v993_v25 }
  0xa9   : > { %1020 = vrot.lane.b32.xlu0 %v747_v53, %s1419_s23  ;;  %v955_v63 = vmul.f32 2.0, %v1827_v52  ;;  %v963_v61 = vmul.f32 %v747_v53, %v747_v53  ;;  %v967_v31 = vmul.f32 %v1827_v52, %v1827_v52  ;;  %v1009_v51 = vmul.f32 %v1864_v24, %v1864_v24 }
  0xaa   : > { %v1012_v6 = vsub.f32 %v1004_v16, %v1008_v48 }
  0xab   : > { %v959_v5 = vmul.f32 %v955_v63, %v747_v53  ;;  %v971_v43 = vsub.f32 %v963_v61, %v967_v31  ;;  %v1013_v50 = vsub.f32 %v1005_v45, %v1009_v51 }
  0xad   : > { %1036 = vrot.lane.b32.xlu1 %v959_v5, %s1420_s24  ;;  %1034 = vrot.lane.b32.xlu0 %v958_v28, %s1420_s24  ;;  %v975_v32 = vmul.f32 2.0, %v959_v5  ;;  %v983_v13 = vmul.f32 %v971_v43, %v971_v43  ;;  %v987_v44 = vmul.f32 %v959_v5, %v959_v5 }
  0xaf   : > { %v1858_v59 = vmul.f32 %v975_v32, %v971_v43  ;;  %v991_v62 = vsub.f32 %v983_v13, %v987_v44 }
  0xb1   : > { %1040 = vrot.lane.b32.xlu1 %v961_v1, %s1420_s24  ;;  %1038 = vrot.lane.b32.xlu0 %v960_v57, %s1420_s24  ;;  %v995_v26 = vmul.f32 2.0, %v1858_v59  ;;  %v1003_v40 = vmul.f32 %v991_v62, %v991_v62  ;;  %v1007_v42 = vmul.f32 %v1858_v59, %v1858_v59 }
  0xb3   : > { %v999_v37 = vmul.f32 %v995_v26, %v991_v62  ;;  %v1011_v20 = vsub.f32 %v1003_v40, %v1007_v42 }
  0xb5   : > { %1052 = vrot.lane.b32.xlu1 %v971_v43, %s1421_s25  ;;  %1050 = vrot.lane.b32.xlu0 %v970_v17, %s1421_s25 }
  0xb9   : > { %1056 = vrot.lane.b32.xlu1 %v973_v12, %s1421_s25  ;;  %1054 = vrot.lane.b32.xlu0 %v972_v10, %s1421_s25 }
  0xbd   : > { %1068 = vrot.lane.b32.xlu1 %v991_v62, %s1419_s23  ;;  %1066 = vrot.lane.b32.xlu0 %v990_v23, %s1419_s23 }
  0xc1   : > { %1072 = vrot.lane.b32.xlu1 %v993_v25, %s1419_s23  ;;  %1070 = vrot.lane.b32.xlu0 %v992_v21, %s1419_s23 }
  0xc5   : > { %1084 = vrot.lane.b32.xlu1 %v999_v37, %s1420_s24  ;;  %1082 = vrot.lane.b32.xlu0 %v998_v39, %s1420_s24 }
  0xc9   : > { %1088 = vrot.lane.b32.xlu1 %v1001_v49, %s1420_s24  ;;  %1086 = vrot.lane.b32.xlu0 %v1000_v33, %s1420_s24 }
  0xcd   : > { %1100 = vrot.lane.b32.xlu1 %v1011_v20, %s1421_s25  ;;  %1098 = vrot.lane.b32.xlu0 %v1010_v46, %s1421_s25 }
  0xd1   : > { %1104 = vrot.lane.b32.xlu1 %v1013_v50, %s1421_s25  ;;  %1102 = vrot.lane.b32.xlu0 %v1012_v6, %s1421_s25 }
  0xe0   : > { %v1023_v53 = vpop.permute.xlu1 %1022 }
  0xe7   : > { %v1019_v47 = vpop.permute.xlu0 %1018 }
  0xe8   : > { %v1111_v58 = vsel %vm1110_vm5, %v1819_v54, %v1019_v47  ;;  %v1113_v54 = vsel %vm1110_vm5, %v1767_v29, %v1023_v53 }
 0x100   : > { %v1025_v63 = vpop.permute.xlu1 %1024 }
 0x11b   : > { %v1021_v28 = vpop.permute.xlu0 %1020 }
 0x11c   : > { %v1112_v61 = vsel %vm1110_vm5, %v1827_v52, %v1021_v28  ;;  %v1114_v52 = vsel %vm1110_vm5, %v1825_v4, %v1025_v63 }
 0x11f   : > { %v1037_v22 = vpop.permute.xlu1 %1036  ;;  %v1035_v5 = vpop.permute.xlu0 %1034 }
 0x120   : > { %v1117_v1 = vsel %vm1115_vm1, %v1112_v61, %v1037_v22  ;;  %v1116_v31 = vsel %vm1115_vm1, %v1111_v58, %v1035_v5 }
 0x123   : > { %v1041_v56 = vpop.permute.xlu1 %1040  ;;  %v1039_v57 = vpop.permute.xlu0 %1038 }
 0x124   : > { %v1119_v43 = vsel %vm1115_vm1, %v1114_v52, %v1041_v56  ;;  %v1118_v7 = vsel %vm1115_vm1, %v1113_v54, %v1039_v57 }
 0x127   : > { %v1053_v2 = vpop.permute.xlu1 %1052  ;;  %v1051_v17 = vpop.permute.xlu0 %1050 }
 0x128   : > { %v1122_v27 = vsel %vm1120_vm2, %v1117_v1, %v1053_v2  ;;  %v1121_v8 = vsel %vm1120_vm2, %v1116_v31, %v1051_v17 }
 0x129   : > { %1139 = vst [vmem:[%s1901_s28 + $0x10] sm:$0xff] %v1122_v27  ;;  %1137 = vst [vmem:[%s1901_s28] sm:$0xff] %v1121_v8 }
 0x12b   : > { %v1057_v9 = vpop.permute.xlu1 %1056  ;;  %v1055_v10 = vpop.permute.xlu0 %1054 }
 0x12c   : > { %v1124_v0 = vsel %vm1120_vm2, %v1119_v43, %v1057_v9  ;;  %v1123_v11 = vsel %vm1120_vm2, %v1118_v7, %v1055_v10 }
 0x12d   : > { %1143 = vst [vmem:[%s1901_s28 + $0x30] sm:$0xff] %v1124_v0  ;;  %1141 = vst [vmem:[%s1901_s28 + $0x20] sm:$0xff] %v1123_v11 }
 0x12f   : > { %v1069_v32 = vpop.permute.xlu1 %1068  ;;  %v1067_v12 = vpop.permute.xlu0 %1066 }
 0x130   : > { %v1126_v23 = vsel %vm1110_vm5, %v1858_v59, %v1069_v32  ;;  %v1125_v55 = vsel %vm1110_vm5, %v1856_v18, %v1067_v12 }
 0x133   : > { %v1073_v29 = vpop.permute.xlu1 %1072  ;;  %v1071_v13 = vpop.permute.xlu0 %1070 }
 0x134   : > { %v1128_v18 = vsel %vm1110_vm5, %v1864_v24, %v1073_v29  ;;  %v1127_v59 = vsel %vm1110_vm5, %v1862_v30, %v1071_v13 }
 0x137   : > { %v1085_v4 = vpop.permute.xlu1 %1084  ;;  %v1083_v44 = vpop.permute.xlu0 %1082 }
 0x138   : > { %v1130_v60 = vsel %vm1115_vm1, %v1126_v23, %v1085_v4  ;;  %v1129_v19 = vsel %vm1115_vm1, %v1125_v55, %v1083_v44 }
 0x13b   : > { %v1089_v14 = vpop.permute.xlu1 %1088  ;;  %v1087_v15 = vpop.permute.xlu0 %1086 }
 0x13c   : > { %v1132_v26 = vsel %vm1115_vm1, %v1128_v18, %v1089_v14  ;;  %v1131_v34 = vsel %vm1115_vm1, %v1127_v59, %v1087_v15 }
 0x13f   : > { %v1101_v62 = vpop.permute.xlu1 %1100  ;;  %v1099_v3 = vpop.permute.xlu0 %1098 }
 0x140   : > { %v1134_v21 = vsel %vm1120_vm2, %v1130_v60, %v1101_v62  ;;  %v1133_v25 = vsel %vm1120_vm2, %v1129_v19, %v1099_v3 }
 0x141   : > { %1140 = vst [vmem:[%s1901_s28 + $0x18] sm:$0xff] %v1134_v21  ;;  %1138 = vst [vmem:[%s1901_s28 + $0x8] sm:$0xff] %v1133_v25 }
 0x143   : > { %v1105_v35 = vpop.permute.xlu1 %1104  ;;  %v1103_v37 = vpop.permute.xlu0 %1102 }
 0x144   : > { %v1136_v24 = vsel %vm1120_vm2, %v1132_v26, %v1105_v35  ;;  %v1135_v30 = vsel %vm1120_vm2, %v1131_v34, %v1103_v37 }
 0x145   : > { %1144 = vst [vmem:[%s1901_s28 + $0x38] sm:$0xff] %v1136_v24  ;;  %1142 = vst [vmem:[%s1901_s28 + $0x28] sm:$0xff] %v1135_v30 }
 0x146   : > { %1364 = shalt.err (!%p1361_p3)
}
 0x147   : > { %s1365_s18 = scalar_lea.hbm %s1934_s4, 1024  ;;  %s1369_s21 = scalar_lea.hbm %s1987_s1, 8192 }
 0x148   : > { %p1366_p4 = scmp.ne.s32.totalorder %s1934_s4, %s1365_s18  ;;  %p1370_p9 = scmp.lt.s32.totalorder %s1934_s4, %s1987_s1 }
 0x149   : > { %p1371_p10 = scmp.lt.s32.totalorder %s1369_s21, %s1365_s18 }
 0x14a   : > { %p1367_p7 = pnand %p1366_p4, %p1473_p5 }
 0x14b   : > { %p1372_p11 = por %p1371_p10, %p1370_p9 }
 0x14c   : > { %p1368_p8 = pneg %p1367_p7 }
 0x14e   : > { %p1373_p12 = pnand %p1372_p11, %p1368_p8 }
 0x150   : > { %1376 = shalt.err (!%p1373_p12)
}
 0x151   : > { %s1423_s24 = smov 256   ;;  %s1424_s25 = smov 16  }
 0x152   : > { %1285 = dma.vmem_to_hbm [thread:$0]  (%p1473_p5), %s1936_s30, 1024, %s1934_s4, %s1946_s5, %s1423_s24, %s1423_s24, %s1424_s25  }
 0x153 PF: > { %p1291_p13 = scmp.ge.s32.totalorder %s1411_s9, 2  ;;  %s1175_s26 = sand.u32 1, %s1399_s6  }
 0x154   : > { %s1176_s27 = scalar_lea.sflag [#allocation3], %s1175_s26 }
 0x155   : > { %p1288_p0 = pnand %p1291_p13, %p1477_p6 }
 0x157   : > { %p1289_p1 = pneg %p1288_p0 }
 0x159   : > { %1394 = dma.done.wait (%p1289_p1), %s1176_s27, 1024  }
 0x15a   : > { %1396 = vsyncadd (%p1289_p1), %s1176_s27, 4294966272  ;;  %p11_p2 = scmp.ge.s32.totalorder %s1460_s12, 10   ;;  %s1994_s6 = smov %s1403_s7 }
 0x15b   : > { %s1995_s7 = smov %s1407_s8  ;;  %s1996_s8 = smov %s1471_s15 }
 0x15c   : > { %s1997_s9 = smov %s1460_s12  ;;  %13 = sbr.rel (!%p11_p2) target bundleno = 3 (0x3), region = 59 }
 0x161   :  { %1181 = vsyncpa [#allocation3], 1 }
 0x162   :  { %1183 = vsyncpa [#allocation3 + $0x1], 1 }

</bundles_post_ra>
